<compile_context>
chip_gen: v6e
topology: v6e:2x2x1
jax: 0.10.0
libtpu: 0.0.40
codegen_flags: <defaults>
</compile_context>

<pallas_src>
import functools

import jax
import jax.numpy as jnp
from jax.experimental import pallas as pl
from jax.experimental.pallas import tpu as pltpu

_LANE = 1024  # lane-dense last dim (large multiple of 128 -> unmasked vst)


def _surrogate_kernel(x_ref, o_ref, *, alpha: float, spiking: bool):
    x = x_ref[...]
    if spiking:
        # heaviside: spike = 1.0 where x >= 0 else 0.0 (alpha unused)
        o_ref[...] = (x >= 0).astype(o_ref.dtype)
    else:
        # primitive: sigmoid(alpha * x); compute in f32 regardless of input
        # dtype (memory-bound -> free), cast only on the store.
        z = x.astype(jnp.float32) * jnp.float32(alpha)
        o_ref[...] = (1.0 / (1.0 + jnp.exp(-z))).astype(o_ref.dtype)


def _vmem_plan():
    """Return (target_block_bytes, vmem_limit_bytes).

    Conservative (4 MiB blocks / 32 MiB limit) unless we can positively
    identify a large-VMEM generation (v5e/v6e: 128 MiB physical per TC), in
    which case we use 8 MiB blocks / 64 MiB limit.  Safe on v7x (64 MiB).
    """
    target_block_bytes = 4 << 20
    vmem_limit = 32 << 20
    try:
        cap = int(getattr(pltpu.get_tpu_info(), "vmem_capacity_bytes", 0))
        if cap >= (96 << 20):
            target_block_bytes = 8 << 20
            vmem_limit = 64 << 20
    except Exception:
        pass
    return target_block_bytes, vmem_limit


def surrogate_forward(x: jax.Array, alpha: float, spiking: bool = True) -> jax.Array:
    """Forward of SurrogateFunctionBase. x: any-shape float array (e.g. NCHW)."""
    orig_shape = x.shape
    dtype = x.dtype
    total = int(x.size)
    lane = _LANE
    itemsize = jnp.dtype(dtype).itemsize

    target_block_bytes, vmem_limit = _vmem_plan()

    # Flatten to a lane-dense (rows, lane) slab.  Pad only when the element
    # count is not lane-aligned; the aligned case (common for NN tensors)
    # avoids the extra pad + slice HBM passes entirely.
    rows = -(-total // lane)
    padded = rows * lane
    flat = x.reshape(-1)
    if padded != total:
        flat = jnp.pad(flat, (0, padded - total))
    x2 = flat.reshape(rows, lane)

    # dtype-aware block: ~target_block_bytes per block, row count a multiple
    # of 8.  Partial last grid block is masked by Pallas, so no row rounding.
    block_rows = max(8, (target_block_bytes // (lane * itemsize)) // 8 * 8)
    block_rows = min(block_rows, rows)  # small inputs: single full-extent block
    grid = (pl.cdiv(rows, block_rows),)

    kernel = functools.partial(_surrogate_kernel, alpha=float(alpha), spiking=spiking)

    n = rows * lane
    cost = pl.CostEstimate(
        flops=(1 if spiking else 3) * n,
        transcendentals=0 if spiking else n,
        bytes_accessed=2 * n * itemsize,
    )

    out2 = pl.pallas_call(
        kernel,
        out_shape=jax.ShapeDtypeStruct((rows, lane), dtype),
        grid=grid,
        in_specs=[pl.BlockSpec((block_rows, lane), lambda i: (i, 0))],
        out_specs=pl.BlockSpec((block_rows, lane), lambda i: (i, 0)),
        compiler_params=pltpu.CompilerParams(
            dimension_semantics=("parallel",),
            vmem_limit_bytes=vmem_limit,
        ),
        cost_estimate=cost,
    )(x2)

    out_flat = out2.reshape(-1)
    if padded != total:
        out_flat = out_flat[:total]
    return out_flat.reshape(orig_shape)


if __name__ == "__main__":
    key = jax.random.PRNGKey(0)
    x = jax.random.normal(key, (2, 4, 16, 16), dtype=jnp.float32)
    alpha = 2.0  # deterministic "buffer" value, as set in __init__

    # spiking=True branch (heaviside)
    y_spike = surrogate_forward(x, alpha, spiking=True)
    jax.block_until_ready(y_spike)
    ref_spike = (x >= 0).astype(jnp.float32)
    assert jnp.allclose(y_spike, ref_spike), "spiking branch mismatch"

    # spiking=False branch (primitive: sigmoid(alpha*x))
    y_prim = surrogate_forward(x, alpha, spiking=False)
    jax.block_until_ready(y_prim)
    ref_prim = jax.nn.sigmoid(alpha * x)
    assert jnp.allclose(y_prim, ref_prim, atol=1e-5), "primitive branch mismatch"

    # larger, non-lane-aligned shape -> exercises the padded / partial path
    x_big = jax.random.normal(jax.random.PRNGKey(1), (4, 8, 63, 63), dtype=jnp.float32)
    y_big = surrogate_forward(x_big, alpha, spiking=False)
    jax.block_until_ready(y_big)
    assert jnp.allclose(y_big, jax.nn.sigmoid(alpha * x_big), atol=1e-5), "padded path mismatch"

    # bf16 input: kernel computes in f32 and casts on store
    x_bf = x.astype(jnp.bfloat16)
    y_bf = surrogate_forward(x_bf, alpha, spiking=False)
    jax.block_until_ready(y_bf)
    ref_bf = jax.nn.sigmoid(alpha * x_bf.astype(jnp.float32))
    assert jnp.allclose(y_bf.astype(jnp.float32), ref_bf, atol=1e-2), "bf16 path mismatch"

    print("KERNEL_OK")
</pallas_src>

<mosaic_0001>
module attributes {stable_mosaic.version = 11 : i64} {
  func.func @_surrogate_kernel(%arg0: i32, %arg1: memref<2x1024xf32, #tpu.memory_space<vmem>>, %arg2: memref<2x1024xf32, #tpu.memory_space<vmem>>) attributes {dimension_semantics = [#tpu.dimension_semantics<parallel>], iteration_bounds = array<i64: 1>, scalar_prefetch = 0 : i64, scratch_operands = 0 : i64, tpu.core_type = #tpu.core_type<tc>, window_params = [{transform_indices = @transform_0, window_bounds = array<i64: 2, 1024>}, {transform_indices = @transform_1, window_bounds = array<i64: 2, 1024>}]} {
    %c0 = arith.constant 0 : index
    %c0_0 = arith.constant 0 : index
    %0 = vector.load %arg1[%c0, %c0_0] : memref<2x1024xf32, #tpu.memory_space<vmem>>, vector<2x1024xf32>
    %cst = arith.constant 0.000000e+00 : f32
    %1 = vector.broadcast %cst : f32 to vector<2x1024xf32>
    %2 = arith.cmpf oge, %0, %1 : vector<2x1024xf32>
    %3 = arith.extui %2 : vector<2x1024xi1> to vector<2x1024xi32>
    %4 = arith.sitofp %3 : vector<2x1024xi32> to vector<2x1024xf32>
    %c0_1 = arith.constant 0 : index
    %c0_2 = arith.constant 0 : index
    %5 = vector.load %arg2[%c0_1, %c0_2] : memref<2x1024xf32, #tpu.memory_space<vmem>>, vector<2x1024xf32>
    tpu.vector_store %arg2[%c0_1, %c0_2], %4 {strides = array<i32>} : memref<2x1024xf32, #tpu.memory_space<vmem>>, vector<2x1024xf32>,
    return
  }
  func.func @transform_0(%arg0: i32) -> (i32, i32) {
    %c0_i32 = arith.constant 0 : i32
    %c0_i32_0 = arith.constant 0 : i32
    return %arg0, %c0_i32 : i32, i32
  }
  func.func @transform_1(%arg0: i32) -> (i32, i32) {
    %c0_i32 = arith.constant 0 : i32
    %c0_i32_0 = arith.constant 0 : i32
    return %arg0, %c0_i32 : i32, i32
  }
}

</mosaic_0001>

<bundles_post_ra>
// kernel: tpu_custom_call.1
= control target key start
LH: loop header
LB: loop body
LE: loop exit
PB: predicated region body
PF: predicated region fallthrough
CT: control target
= control target key end

     0   :  { %6 = vsyncpa [#allocation3], 0  ;;  %s114_s0 = inlined_call_operand.hbm [shape: f32[2,1024], index: 0, kind: input, shape index: {}]   ;;  %s115_s1 = inlined_call_operand.hbm [shape: f32[2,1024], index: 1, kind: output, shape index: {}]  }
   0x1   :  { %7 = vsyncpa [#allocation4], 0  ;;  %s95_s6 = smov [#allocation2]  }
   0x2   :  { %s14_s7 = sshll.u32 %s95_s6, 4  ;;  %s15_s7 = int_to_ptr.vmem [resolvable:$true] %s14_s7 }
   0x3   :  { %s59_s8 = scalar_lea.vmem %s15_s7, 256  ;;  %p64_p1 = scmp.lt.s32.totalorder %s15_s7, %s15_s7 }
   0x4   :  { %p60_p0 = scmp.ne.s32.totalorder %s15_s7, %s59_s8  ;;  %p65_p2 = scmp.lt.s32.totalorder %s59_s8, %s59_s8 }
   0x6   :  { %p66_p3 = por %p65_p2, %p64_p1 }
   0x8   :  { %p67_p4 = pnand %p66_p3, %p60_p0 }
   0xa   :  { %70 = shalt.err (!%p67_p4)
}
   0xb   :  { %17 = dma.hbm_to_vmem [thread:$0]  %s114_s0, 256, %s15_s7, [#allocation3]  }
   0xc   :  { %91 = dma.done.wait [#allocation3], 256  }
   0xd   :  { %92 = vsyncadd [#allocation3], 4294967040  ;;  %s96_s11 = smov [#allocation5]   ;;  %v21_v0 = vld [vmem:[#allocation2] sm:$0xff]  ;;  %v22_v1 = vld [vmem:[#allocation2 + $0x8] sm:$0xff]  ;;  %v97_v2 = vmov 0.0  }
   0xe   :  { %s37_s12 = sshll.u32 %s96_s11, 4  ;;  %vm23_vm0 = vcmp.ge.f32.partialorder %v21_v0, 0.0  ;;  %vm24_vm1 = vcmp.ge.f32.partialorder %v22_v1, 0.0  ;;  %s38_s12 = int_to_ptr.vmem [resolvable:$true] %s37_s12 }
   0xf   :  { %v46_v3 = vsel %vm23_vm0, 1.0, %v97_v2  ;;  %v47_v4 = vsel %vm24_vm1, 1.0, %v97_v2  ;;  %s71_s13 = scalar_lea.vmem %s38_s12, 256  ;;  %p76_p6 = scmp.lt.s32.totalorder %s38_s12, %s38_s12 }
  0x10   :  { %29 = vst [vmem:[#allocation5] sm:$0xff] %v46_v3  ;;  %30 = vst [vmem:[#allocation5 + $0x8] sm:$0xff] %v47_v4  ;;  %p72_p5 = scmp.ne.s32.totalorder %s38_s12, %s71_s13  ;;  %p77_p7 = scmp.lt.s32.totalorder %s71_s13, %s71_s13 }
  0x12   :  { %p78_p8 = por %p77_p7, %p76_p6 }
  0x14   :  { %p79_p9 = pnand %p78_p8, %p72_p5 }
  0x16   :  { %82 = shalt.err (!%p79_p9)
}
  0x17   :  { %40 = dma.vmem_to_hbm [thread:$0]  %s38_s12, 256, %s115_s1, [#allocation4]  }
  0x18   :  { %93 = dma.done.wait [#allocation4], 256  }
  0x19   :  { %94 = vsyncadd [#allocation4], 4294967040 }
  0x1a   :  { %44 = vsyncpa [#allocation3], 1 }
  0x1b   :  { %45 = vsyncpa [#allocation4], 1 }

</bundles_post_ra>
